<compile_context>
chip_gen: v7x
topology: tpu7x:2x2x1
jax: 0.10.0
libtpu: 0.0.40
codegen_flags: <defaults>
</compile_context>

<pallas_src>
import jax
import jax.numpy as jnp
from jax.experimental import pallas as pl
from jax.experimental.pallas import tpu as pltpu

LRELU_SLOPE = 0.2
BN_EPS = 1e-5


# ---------------------------------------------------------------------------
# Pallas kernels: (tm, K)bf16 @ (K, OC)bf16 -> f32 acc, (+shift), LeakyReLU,
# bf16 store.  BN scale is pre-folded into the weights.
# ---------------------------------------------------------------------------
def _mm_lrelu_kernel(x_ref, w_ref, o_ref):
    y = jnp.dot(x_ref[...], w_ref[...], preferred_element_type=jnp.float32)
    o_ref[...] = jnp.where(y >= 0.0, y, LRELU_SLOPE * y).astype(o_ref.dtype)


def _mm_shift_lrelu_kernel(x_ref, w_ref, shift_ref, o_ref):
    y = jnp.dot(x_ref[...], w_ref[...], preferred_element_type=jnp.float32)
    y = y + shift_ref[...]                      # folded BatchNorm shift
    o_ref[...] = jnp.where(y >= 0.0, y, LRELU_SLOPE * y).astype(o_ref.dtype)


def _pick_tm(m):
    """Row tile: a divisor of m, multiple of 16 (bf16 sublanes), <= 256, and
    giving >= 2 grid steps when possible (v7x has 2 TensorCores)."""
    for tm in (256, 128, 64, 32, 16):
        if tm < m and m % tm == 0:
            return tm
    return m   # single full block (block dim == full array dim is legal)


def fused_matmul_shift_lrelu(patches, w, shift):
    """patches: (M, K) bf16, w: (K, OC) bf16, shift: (1, OC) f32 or None.
    Returns (M, OC) bf16 = LeakyReLU_0.2(patches @ w + shift)."""
    M, K = patches.shape
    Kw, OC = w.shape
    assert K == Kw, (K, Kw)
    tm = _pick_tm(M)
    grid = (M // tm,)

    # Real VMEM need: double-buffered bf16 blocks + f32 epilogue temps.
    footprint = 2 * (tm * K + K * OC + tm * OC) * 2 + OC * 8 + tm * OC * 4
    vmem_limit = max(4 * 1024 * 1024, min(32 * 1024 * 1024, 4 * footprint))

    x_spec = pl.BlockSpec((tm, K), lambda i: (i, 0))     # row tile, pipelined
    w_spec = pl.BlockSpec((K, OC), lambda i: (0, 0))     # weights resident
    out_spec = pl.BlockSpec((tm, OC), lambda i: (i, 0))

    if shift is None:
        kernel = _mm_lrelu_kernel
        in_specs = [x_spec, w_spec]
        args = (patches, w)
    else:
        kernel = _mm_shift_lrelu_kernel
        in_specs = [x_spec, w_spec, pl.BlockSpec((1, OC), lambda i: (0, 0))]
        args = (patches, w, shift)

    return pl.pallas_call(
        kernel,
        out_shape=jax.ShapeDtypeStruct((M, OC), jnp.bfloat16),
        grid=grid,
        in_specs=in_specs,
        out_specs=out_spec,
        compiler_params=pltpu.CompilerParams(
            dimension_semantics=("parallel",),
            vmem_limit_bytes=vmem_limit,
        ),
    )(*args)


# ---------------------------------------------------------------------------
# Glue: NHWC im2col (plain JAX, bf16, channels stay lane-dense, no padding of
# the patch matrix).
# ---------------------------------------------------------------------------
def _im2col_nhwc(x, kh, kw, stride, pad):
    """(N, H, W, C) -> (N*oh*ow, kh*kw*C); column order (kh, kw, C), C fastest."""
    if pad > 0:
        x = jnp.pad(x, ((0, 0), (pad, pad), (pad, pad), (0, 0)))
    N, H, W, C = x.shape
    oh = (H - kh) // stride + 1
    ow = (W - kw) // stride + 1
    cols = []
    for i in range(kh):
        for j in range(kw):
            cols.append(x[:, i:i + stride * oh:stride, j:j + stride * ow:stride, :])
    p = jnp.concatenate(cols, axis=-1)            # (N, oh, ow, kh*kw*C)
    return p.reshape(N * oh * ow, kh * kw * C), oh, ow


def conv_bn_lrelu(x_nhwc, w, shift, kh, kw, stride, pad):
    """One Conv2d (+ folded BN) + LeakyReLU layer. Activations stay NHWC bf16."""
    N = x_nhwc.shape[0]
    patches, oh, ow = _im2col_nhwc(x_nhwc, kh, kw, stride, pad)
    y = fused_matmul_shift_lrelu(patches, w, shift)
    return y.reshape(N, oh, ow, w.shape[1])


# ---------------------------------------------------------------------------
# One-time parameter preprocessing (arrays only; no ints in the traced pytree)
# ---------------------------------------------------------------------------
def _prep_conv(w_ochw, bn):
    """(OC, C, KH, KW) torch weights -> ((KH*KW*C, OC) bf16, shift (1,OC) f32 | None).
    BN scale is folded into the weights in f32 before the bf16 cast."""
    OC, C, KH, KW = w_ochw.shape
    wmat = w_ochw.transpose(2, 3, 1, 0).reshape(KH * KW * C, OC).astype(jnp.float32)
    shift = None
    if bn is not None:
        gamma, beta, mean, var = bn
        scale = gamma / jnp.sqrt(var + BN_EPS)
        shift = (beta - mean * scale).reshape(1, OC).astype(jnp.float32)
        wmat = wmat * scale[None, :]
    return wmat.astype(jnp.bfloat16), shift


def prepare_params(params):
    w1, _ = _prep_conv(params["w1"], None)
    w2, s2 = _prep_conv(params["w2"], params["bn2"])
    w3, s3 = _prep_conv(params["w3"], params["bn3"])
    # Final conv (4ndf -> 1, k4 s1 p0): degenerate (M=N, OC=1) matmul, kept as
    # a plain f32 dot + sigmoid instead of a padded MXU launch.
    w4 = params["w4"].transpose(2, 3, 1, 0).reshape(-1, 1).astype(jnp.float32)
    return {"w1": w1, "w2": w2, "shift2": s2, "w3": w3, "shift3": s3, "w4": w4}


# ---------------------------------------------------------------------------
# Discriminator forward (eval mode)
# ---------------------------------------------------------------------------
# TODO(synk): Dropout(0.2) is eval-mode identity here (no stochastic masking).
def discriminator_forward(x_nchw, prep):
    # NCHW -> NHWC once, cast to bf16 once; all activations stay NHWC bf16.
    h = jnp.transpose(x_nchw, (0, 2, 3, 1)).astype(jnp.bfloat16)
    h = conv_bn_lrelu(h, prep["w1"], None,           4, 4, 2, 1)   # 1    -> ndf
    h = conv_bn_lrelu(h, prep["w2"], prep["shift2"], 4, 4, 2, 1)   # ndf  -> 2ndf
    h = conv_bn_lrelu(h, prep["w3"], prep["shift3"], 3, 3, 2, 1)   # 2ndf -> 4ndf
    # Head: Conv(4ndf -> 1, 4, 1, 0) + Sigmoid == per-sample dot.
    patches, _, _ = _im2col_nhwc(h, 4, 4, 1, 0)                    # (N, 4*4*4ndf)
    logits = jnp.dot(patches.astype(jnp.float32), prep["w4"])      # (N, 1)
    return jax.nn.sigmoid(logits).reshape(-1)                      # output.view(-1)


def init_params(ndf, key):
    ks = jax.random.split(key, 6)

    def convw(k, oc, ic, kh, kw):
        return 0.02 * jax.random.normal(k, (oc, ic, kh, kw), jnp.float32)

    def bn(k, c):
        k1, k2, k3, k4 = jax.random.split(k, 4)
        gamma = 1.0 + 0.1 * jax.random.normal(k1, (c,), jnp.float32)
        beta = 0.1 * jax.random.normal(k2, (c,), jnp.float32)
        mean = 0.1 * jax.random.normal(k3, (c,), jnp.float32)
        var = jax.random.uniform(k4, (c,), jnp.float32, minval=0.5, maxval=1.5)
        return gamma, beta, mean, var

    return {
        "w1": convw(ks[0], ndf, 1, 4, 4),
        "w2": convw(ks[1], ndf * 2, ndf, 4, 4),
        "bn2": bn(ks[2], ndf * 2),
        "w3": convw(ks[3], ndf * 4, ndf * 2, 3, 3),
        "bn3": bn(ks[4], ndf * 4),
        "w4": convw(ks[5], 1, ndf * 4, 4, 4),
    }


if __name__ == "__main__":
    key = jax.random.PRNGKey(0)
    kx, kp = jax.random.split(key)
    ndf = 8
    # 32x32 single-channel input: 32 -> 16 -> 8 -> 4 -> 1 spatially; output (N,)
    x = jax.random.normal(kx, (2, 1, 32, 32), jnp.float32)
    params = init_params(ndf, kp)

    prep = prepare_params(params)          # one-time weight prep (hoisted)
    fwd = jax.jit(discriminator_forward)
    out = jax.block_until_ready(fwd(x, prep))

    assert out.shape == (2,), out.shape
    assert bool(jnp.all((out >= 0.0) & (out <= 1.0)))
    assert bool(jnp.all(jnp.isfinite(out)))
    print("KERNEL_OK")
</pallas_src>

<mosaic_0001>
module attributes {stable_mosaic.version = 11 : i64} {
  func.func @_mm_lrelu_kernel(%arg0: i32, %arg1: memref<256x16xbf16, #tpu.memory_space<vmem>>, %arg2: memref<16x8xbf16, #tpu.memory_space<vmem>>, %arg3: memref<256x8xbf16, #tpu.memory_space<vmem>>) attributes {dimension_semantics = [#tpu.dimension_semantics<parallel>], iteration_bounds = array<i64: 2>, scalar_prefetch = 0 : i64, scratch_operands = 0 : i64, tpu.core_type = #tpu.core_type<tc>, window_params = [{transform_indices = @transform_0, window_bounds = array<i64: 256, 16>}, {pipeline_mode = #tpu.pipeline_mode<synchronous>, transform_indices = @transform_1, window_bounds = array<i64: 16, 8>}, {transform_indices = @transform_2, window_bounds = array<i64: 256, 8>}]} {
    %c0 = arith.constant 0 : index
    %c0_0 = arith.constant 0 : index
    %0 = vector.load %arg1[%c0, %c0_0] : memref<256x16xbf16, #tpu.memory_space<vmem>>, vector<256x16xbf16>
    %c0_1 = arith.constant 0 : index
    %c0_2 = arith.constant 0 : index
    %1 = vector.load %arg2[%c0_1, %c0_2] : memref<16x8xbf16, #tpu.memory_space<vmem>>, vector<16x8xbf16>
    %cst = arith.constant dense<0.000000e+00> : vector<256x8xf32>
    %2 = tpu.matmul %0, %1, %cst {dimension_numbers = #tpu.dot_dimension_numbers<[1], [0], [0], [1], [0, 0, 1, 1], [], []>} : vector<256x16xbf16>, vector<16x8xbf16>, vector<256x8xf32> -> vector<256x8xf32>
    %cst_3 = arith.constant 0.000000e+00 : f32
    %3 = vector.broadcast %cst_3 : f32 to vector<256x8xf32>
    %4 = arith.cmpf oge, %2, %3 : vector<256x8xf32>
    %cst_4 = arith.constant 2.000000e-01 : f32
    %5 = vector.broadcast %cst_4 : f32 to vector<256x8xf32>
    %6 = arith.mulf %5, %2 : vector<256x8xf32>
    %7 = arith.select %4, %2, %6 : vector<256x8xi1>, vector<256x8xf32>
    %8 = arith.truncf %7 : vector<256x8xf32> to vector<256x8xbf16>
    %c0_5 = arith.constant 0 : index
    %c0_6 = arith.constant 0 : index
    %9 = vector.load %arg3[%c0_5, %c0_6] : memref<256x8xbf16, #tpu.memory_space<vmem>>, vector<256x8xbf16>
    tpu.vector_store %arg3[%c0_5, %c0_6], %8 {strides = array<i32>} : memref<256x8xbf16, #tpu.memory_space<vmem>>, vector<256x8xbf16>,
    return
  }
  func.func @transform_0(%arg0: i32) -> (i32, i32) {
    %c0_i32 = arith.constant 0 : i32
    %c0_i32_0 = arith.constant 0 : i32
    return %arg0, %c0_i32 : i32, i32
  }
  func.func @transform_1(%arg0: i32) -> (i32, i32) {
    %c0_i32 = arith.constant 0 : i32
    %c0_i32_0 = arith.constant 0 : i32
    %c0_i32_1 = arith.constant 0 : i32
    return %c0_i32, %c0_i32_0 : i32, i32
  }
  func.func @transform_2(%arg0: i32) -> (i32, i32) {
    %c0_i32 = arith.constant 0 : i32
    %c0_i32_0 = arith.constant 0 : i32
    return %arg0, %c0_i32 : i32, i32
  }
}

module attributes {stable_mosaic.version = 11 : i64} {
  func.func @_mm_shift_lrelu_kernel(%arg0: i32, %arg1: memref<64x128xbf16, #tpu.memory_space<vmem>>, %arg2: memref<128x16xbf16, #tpu.memory_space<vmem>>, %arg3: memref<1x16xf32, #tpu.memory_space<vmem>>, %arg4: memref<64x16xbf16, #tpu.memory_space<vmem>>) attributes {dimension_semantics = [#tpu.dimension_semantics<parallel>], iteration_bounds = array<i64: 2>, scalar_prefetch = 0 : i64, scratch_operands = 0 : i64, tpu.core_type = #tpu.core_type<tc>, window_params = [{transform_indices = @transform_0, window_bounds = array<i64: 64, 128>}, {pipeline_mode = #tpu.pipeline_mode<synchronous>, transform_indices = @transform_1, window_bounds = array<i64: 128, 16>}, {pipeline_mode = #tpu.pipeline_mode<synchronous>, transform_indices = @transform_2, window_bounds = array<i64: 1, 16>}, {transform_indices = @transform_3, window_bounds = array<i64: 64, 16>}]} {
    %c0 = arith.constant 0 : index
    %c0_0 = arith.constant 0 : index
    %0 = vector.load %arg1[%c0, %c0_0] : memref<64x128xbf16, #tpu.memory_space<vmem>>, vector<64x128xbf16>
    %c0_1 = arith.constant 0 : index
    %c0_2 = arith.constant 0 : index
    %1 = vector.load %arg2[%c0_1, %c0_2] : memref<128x16xbf16, #tpu.memory_space<vmem>>, vector<128x16xbf16>
    %cst = arith.constant dense<0.000000e+00> : vector<64x16xf32>
    %2 = tpu.matmul %0, %1, %cst {dimension_numbers = #tpu.dot_dimension_numbers<[1], [0], [0], [1], [0, 0, 1, 1], [], []>} : vector<64x128xbf16>, vector<128x16xbf16>, vector<64x16xf32> -> vector<64x16xf32>
    %c0_3 = arith.constant 0 : index
    %c0_4 = arith.constant 0 : index
    %3 = vector.load %arg3[%c0_3, %c0_4] : memref<1x16xf32, #tpu.memory_space<vmem>>, vector<1x16xf32>
    %4 = vector.broadcast %3 : vector<1x16xf32> to vector<64x16xf32>
    %5 = arith.addf %2, %4 : vector<64x16xf32>
    %cst_5 = arith.constant 0.000000e+00 : f32
    %6 = vector.broadcast %cst_5 : f32 to vector<64x16xf32>
    %7 = arith.cmpf oge, %5, %6 : vector<64x16xf32>
    %cst_6 = arith.constant 2.000000e-01 : f32
    %8 = vector.broadcast %cst_6 : f32 to vector<64x16xf32>
    %9 = arith.mulf %8, %5 : vector<64x16xf32>
    %10 = arith.select %7, %5, %9 : vector<64x16xi1>, vector<64x16xf32>
    %11 = arith.truncf %10 : vector<64x16xf32> to vector<64x16xbf16>
    %c0_7 = arith.constant 0 : index
    %c0_8 = arith.constant 0 : index
    %12 = vector.load %arg4[%c0_7, %c0_8] : memref<64x16xbf16, #tpu.memory_space<vmem>>, vector<64x16xbf16>
    tpu.vector_store %arg4[%c0_7, %c0_8], %11 {strides = array<i32>} : memref<64x16xbf16, #tpu.memory_space<vmem>>, vector<64x16xbf16>,
    return
  }
  func.func @transform_0(%arg0: i32) -> (i32, i32) {
    %c0_i32 = arith.constant 0 : i32
    %c0_i32_0 = arith.constant 0 : i32
    return %arg0, %c0_i32 : i32, i32
  }
  func.func @transform_1(%arg0: i32) -> (i32, i32) {
    %c0_i32 = arith.constant 0 : i32
    %c0_i32_0 = arith.constant 0 : i32
    %c0_i32_1 = arith.constant 0 : i32
    return %c0_i32, %c0_i32_0 : i32, i32
  }
  func.func @transform_2(%arg0: i32) -> (i32, i32) {
    %c0_i32 = arith.constant 0 : i32
    %c0_i32_0 = arith.constant 0 : i32
    %c0_i32_1 = arith.constant 0 : i32
    return %c0_i32, %c0_i32_0 : i32, i32
  }
  func.func @transform_3(%arg0: i32) -> (i32, i32) {
    %c0_i32 = arith.constant 0 : i32
    %c0_i32_0 = arith.constant 0 : i32
    return %arg0, %c0_i32 : i32, i32
  }
}

module attributes {stable_mosaic.version = 11 : i64} {
  func.func @_mm_shift_lrelu_kernel(%arg0: i32, %arg1: memref<16x144xbf16, #tpu.memory_space<vmem>>, %arg2: memref<144x32xbf16, #tpu.memory_space<vmem>>, %arg3: memref<1x32xf32, #tpu.memory_space<vmem>>, %arg4: memref<16x32xbf16, #tpu.memory_space<vmem>>) attributes {dimension_semantics = [#tpu.dimension_semantics<parallel>], iteration_bounds = array<i64: 2>, scalar_prefetch = 0 : i64, scratch_operands = 0 : i64, tpu.core_type = #tpu.core_type<tc>, window_params = [{transform_indices = @transform_0, window_bounds = array<i64: 16, 144>}, {pipeline_mode = #tpu.pipeline_mode<synchronous>, transform_indices = @transform_1, window_bounds = array<i64: 144, 32>}, {pipeline_mode = #tpu.pipeline_mode<synchronous>, transform_indices = @transform_2, window_bounds = array<i64: 1, 32>}, {transform_indices = @transform_3, window_bounds = array<i64: 16, 32>}]} {
    %c0 = arith.constant 0 : index
    %c0_0 = arith.constant 0 : index
    %0 = vector.load %arg1[%c0, %c0_0] : memref<16x144xbf16, #tpu.memory_space<vmem>>, vector<16x144xbf16>
    %c0_1 = arith.constant 0 : index
    %c0_2 = arith.constant 0 : index
    %1 = vector.load %arg2[%c0_1, %c0_2] : memref<144x32xbf16, #tpu.memory_space<vmem>>, vector<144x32xbf16>
    %cst = arith.constant dense<0.000000e+00> : vector<16x32xf32>
    %2 = tpu.matmul %0, %1, %cst {dimension_numbers = #tpu.dot_dimension_numbers<[1], [0], [0], [1], [0, 0, 1, 1], [], []>} : vector<16x144xbf16>, vector<144x32xbf16>, vector<16x32xf32> -> vector<16x32xf32>
    %c0_3 = arith.constant 0 : index
    %c0_4 = arith.constant 0 : index
    %3 = vector.load %arg3[%c0_3, %c0_4] : memref<1x32xf32, #tpu.memory_space<vmem>>, vector<1x32xf32>
    %4 = vector.broadcast %3 : vector<1x32xf32> to vector<16x32xf32>
    %5 = arith.addf %2, %4 : vector<16x32xf32>
    %cst_5 = arith.constant 0.000000e+00 : f32
    %6 = vector.broadcast %cst_5 : f32 to vector<16x32xf32>
    %7 = arith.cmpf oge, %5, %6 : vector<16x32xf32>
    %cst_6 = arith.constant 2.000000e-01 : f32
    %8 = vector.broadcast %cst_6 : f32 to vector<16x32xf32>
    %9 = arith.mulf %8, %5 : vector<16x32xf32>
    %10 = arith.select %7, %5, %9 : vector<16x32xi1>, vector<16x32xf32>
    %11 = arith.truncf %10 : vector<16x32xf32> to vector<16x32xbf16>
    %c0_7 = arith.constant 0 : index
    %c0_8 = arith.constant 0 : index
    %12 = vector.load %arg4[%c0_7, %c0_8] : memref<16x32xbf16, #tpu.memory_space<vmem>>, vector<16x32xbf16>
    tpu.vector_store %arg4[%c0_7, %c0_8], %11 {strides = array<i32>} : memref<16x32xbf16, #tpu.memory_space<vmem>>, vector<16x32xbf16>,
    return
  }
  func.func @transform_0(%arg0: i32) -> (i32, i32) {
    %c0_i32 = arith.constant 0 : i32
    %c0_i32_0 = arith.constant 0 : i32
    return %arg0, %c0_i32 : i32, i32
  }
  func.func @transform_1(%arg0: i32) -> (i32, i32) {
    %c0_i32 = arith.constant 0 : i32
    %c0_i32_0 = arith.constant 0 : i32
    %c0_i32_1 = arith.constant 0 : i32
    return %c0_i32, %c0_i32_0 : i32, i32
  }
  func.func @transform_2(%arg0: i32) -> (i32, i32) {
    %c0_i32 = arith.constant 0 : i32
    %c0_i32_0 = arith.constant 0 : i32
    %c0_i32_1 = arith.constant 0 : i32
    return %c0_i32, %c0_i32_0 : i32, i32
  }
  func.func @transform_3(%arg0: i32) -> (i32, i32) {
    %c0_i32 = arith.constant 0 : i32
    %c0_i32_0 = arith.constant 0 : i32
    return %arg0, %c0_i32 : i32, i32
  }
}

</mosaic_0001>

<bundles_post_ra>
// kernel: discriminator_forward.3
= control target key start
LH: loop header
LB: loop body
LE: loop exit
PB: predicated region body
PF: predicated region fallthrough
CT: control target
= control target key end

     0   :  { %s1000_s9 = smov 0   ;;  %s1131_s0 = inlined_call_operand.vmem [shape: bf16[512,16], index: 0, kind: input, shape index: {}]   ;;  %s1132_s1 = inlined_call_operand.vmem [shape: bf16[16,8], index: 1, kind: input, shape index: {}]   ;;  %s1133_s2 = inlined_call_operand.vmem [shape: bf16[512,8], index: 2, kind: output, shape index: {}]  }
   0x1 LB: > { %s791_s10 = sadd.s32 4294967295, %s983_s9   ;;  %p795_p0 = scmp.ge.s32.totalorder %s983_s9, 1  ;;  %s983_s9 = sphi %s1000_s9, %s12_s9  }
   0x2   : > { %p113_p1 = scmp.lt.s32.totalorder %s983_s9, 3 }
   0x4   : > { %p114_p2 = pnand %p795_p0, %p113_p1 }
   0x5   : > { %v960_v0 = vld [vmem:[%s1132_s1] sm:$0xff] (!%p114_p2)   ;;  %s796_s13 = sshll.u32 (!%p114_p2), %s791_s10, 5  ;;  %vm268_vm0 = vcmask (!%p114_p2), 130048   ;;  %vm702_vm4 = vcmask (!%p114_p2), 60416  }
   0x6   : > { %117 = sbr.rel (%p114_p2) target bundleno = 269 (0x10d), region = 28  ;;  %p136_p3 = scmp.lt.s32.totalorder (!%p114_p2), %s796_s13, 63  ;;  %916 = vmatprep.subr.bf16.mxu0 (!%p114_p2), %v960_v0  ;;  %950 = vmatprep.subr.bf16.mxu1 (!%p114_p2), %v960_v0 }
   0x7   : > { %917 = vmatpush3.bf16.msra.mxu0 (!%p114_p2), %v960_v0  ;;  %951 = vmatpush3.bf16.msra.mxu1 (!%p114_p2), %v960_v0 }
   0xd   : > { %s1135_s13 = smov (!%p136_p3, %s796_s13), 63 }
   0xe   : > { %s797_s14 = sshll.u32 %s1135_s13, 2 }
   0xf   : > { %s1019_s17 = scalar_lea.vmem %s1131_s0, %s797_s14  ;;  %s1058_s20 = scalar_lea.vmem %s1133_s2, %s797_s14 }
  0x10   : > { %v961_v1 = vld [vmem:[%s1019_s17] sm:$0xff]   ;;  %v963_v3 = vld [vmem:[%s1019_s17 + $0x8] sm:$0xff]   ;;  %v965_v5 = vld [vmem:[%s1019_s17 + $0x10] sm:$0xff]  }
  0x11   : > { %v962_v2 = vld [vmem:[%s1019_s17 + $0x40] sm:$0xff]   ;;  %918 = vmatprep.mubr.msk.bf16.mxu0 %vm268_vm0, %v961_v1  ;;  %v964_v4 = vld [vmem:[%s1019_s17 + $0x48] sm:$0xff]   ;;  %v966_v6 = vld [vmem:[%s1019_s17 + $0x50] sm:$0xff]  }
  0x12   : > { %934 = vmatprep.mubr.msk.bf16.mxu1 %vm268_vm0, %v962_v2  ;;  %919 = vmatmul.mubr.msk.bf16.vlgmr.msra.gmra.mrb[0].mxu0 %vm268_vm0, %v963_v3  ;;  %v967_v7 = vld [vmem:[%s1019_s17 + $0x18] sm:$0xff]   ;;  %v969_v9 = vld [vmem:[%s1019_s17 + $0x20] sm:$0xff]   ;;  %v971_v11 = vld [vmem:[%s1019_s17 + $0x28] sm:$0xff]  }
  0x13   : > { %935 = vmatmul.mubr.msk.bf16.vlgmr.msra.gmra.mrb[0].mxu1 %vm268_vm0, %v964_v4  ;;  %922 = vmatprep.mubr.msk.bf16.mxu0 %vm268_vm0, %v965_v5  ;;  %v968_v8 = vld [vmem:[%s1019_s17 + $0x58] sm:$0xff]   ;;  %v970_v10 = vld [vmem:[%s1019_s17 + $0x60] sm:$0xff]   ;;  %v972_v12 = vld [vmem:[%s1019_s17 + $0x68] sm:$0xff]  }
  0x14   : > { %938 = vmatprep.mubr.msk.bf16.mxu1 %vm268_vm0, %v966_v6  ;;  %v973_v13 = vld [vmem:[%s1019_s17 + $0x30] sm:$0xff]   ;;  %v975_v15 = vld [vmem:[%s1019_s17 + $0x38] sm:$0xff]  }
  0x15   : > { %v974_v14 = vld [vmem:[%s1019_s17 + $0x70] sm:$0xff]   ;;  %v976_v16 = vld [vmem:[%s1019_s17 + $0x78] sm:$0xff]  }
  0x1a   : > { %923 = vmatmul.mubr.msk.bf16.gmra.mrb[4].mxu0 %vm268_vm0, %v967_v7 }
  0x1b   : > { %939 = vmatmul.mubr.msk.bf16.gmra.mrb[4].mxu1 %vm268_vm0, %v968_v8  ;;  %926 = vmatprep.mubr.msk.bf16.mxu0 %vm268_vm0, %v969_v9 }
  0x1c   : > { %942 = vmatprep.mubr.msk.bf16.mxu1 %vm268_vm0, %v970_v10 }
  0x22   : > { %927 = vmatmul.mubr.msk.bf16.gmra.mrb[8].mxu0 %vm268_vm0, %v971_v11 }
  0x23   : > { %943 = vmatmul.mubr.msk.bf16.gmra.mrb[8].mxu1 %vm268_vm0, %v972_v12  ;;  %930 = vmatprep.mubr.msk.bf16.mxu0 %vm268_vm0, %v973_v13 }
  0x24   : > { %946 = vmatprep.mubr.msk.bf16.mxu1 %vm268_vm0, %v974_v14 }
  0x2a   : > { %931 = vmatmul.mubr.msk.bf16.gmra.mrb[12].mxu0 %vm268_vm0, %v975_v15 }
  0x2b   : > { %947 = vmatmul.mubr.msk.bf16.gmra.mrb[12].mxu1 %vm268_vm0, %v976_v16 }
  0xe5   : > { %v920_v17 = vpop.f32.mrb[0].mxu0 }
  0xe6   : > { %vm480_vm1 = vcmp.ge.f32.partialorder %v920_v17, 0.0  ;;  %v512_v18 = vmul.f32 0.2, %v920_v17  ;;  %v936_v19 = vpop.f32.mrb[0].mxu1  ;;  %v351_v20 = vpop.f32.mrb[1].mxu0 }
  0xe7   : > { %vm496_vm2 = vcmp.ge.f32.partialorder %v936_v19, 0.0  ;;  %v528_v21 = vmul.f32 0.2, %v936_v19  ;;  %vm478_vm3 = vcmp.ge.f32.partialorder %v351_v20, 0.0  ;;  %v510_v22 = vmul.f32 0.2, %v351_v20 }
  0xe8   : > { %v544_v23 = vsel %vm480_vm1, %v920_v17, %v512_v18  ;;  %v415_v24 = vpop.f32.mrb[1].mxu1  ;;  %v921_v25 = vpop.f32.mrb[2].mxu0 }
  0xe9   : > { %v869_v26 = vpack.c.bf16 %v544_v23, %v544_v23  ;;  %v560_v27 = vsel %vm496_vm2, %v936_v19, %v528_v21  ;;  %v542_v28 = vsel %vm478_vm3, %v351_v20, %v510_v22  ;;  %vm494_vm5 = vcmp.ge.f32.partialorder %v415_v24, 0.0  ;;  %v937_v29 = vpop.f32.mrb[2].mxu1  ;;  %v354_v30 = vpop.f32.mrb[3].mxu0 }
  0xea   : > { %v885_v31 = vpack.c.bf16 %v560_v27, %v560_v27  ;;  %v867_v32 = vpack.c.bf16 %v542_v28, %v542_v28  ;;  %v526_v33 = vmul.f32 0.2, %v415_v24  ;;  %vm481_vm6 = vcmp.ge.f32.partialorder %v921_v25, 0.0  ;;  %v418_v34 = vpop.f32.mrb[3].mxu1 }
  0xeb   : > { %705 = vst.msk [vmem:[%s1058_s20 + $0x8] sm:$0xf] %vm702_vm4, %v869_v26  ;;  %v513_v35 = vmul.f32 0.2, %v921_v25  ;;  %vm497_vm7 = vcmp.ge.f32.partialorder %v937_v29, 0.0  ;;  %vm479_vm8 = vcmp.ge.f32.partialorder %v354_v30, 0.0 }
  0xec   : > { %v529_v36 = vmul.f32 0.2, %v937_v29  ;;  %721 = vst.msk [vmem:[%s1058_s20 + $0x48] sm:$0xf] %vm702_vm4, %v885_v31  ;;  %703 = vst.msk [vmem:[%s1058_s20] sm:$0xf] %vm702_vm4, %v867_v32  ;;  %v558_v37 = vsel %vm494_vm5, %v415_v24, %v526_v33 }
  0xed   : > { %v511_v38 = vmul.f32 0.2, %v354_v30  ;;  %vm495_vm9 = vcmp.ge.f32.partialorder %v418_v34, 0.0  ;;  %v527_v39 = vmul.f32 0.2, %v418_v34  ;;  %v883_v40 = vpack.c.bf16 %v558_v37, %v558_v37  ;;  %v924_v43 = vpop.f32.mrb[4].mxu0 }
  0xee   : > { %v545_v41 = vsel %vm481_vm6, %v921_v25, %v513_v35  ;;  %v561_v42 = vsel %vm497_vm7, %v937_v29, %v529_v36  ;;  %v940_v48 = vpop.f32.mrb[4].mxu1  ;;  %v367_v49 = vpop.f32.mrb[5].mxu0  ;;  %vm484_vm10 = vcmp.ge.f32.partialorder %v924_v43, 0.0  ;;  %v516_v52 = vmul.f32 0.2, %v924_v43 }
  0xef   : > { %v870_v44 = vpack.c.bf16 %v545_v41, %v545_v41  ;;  %v886_v45 = vpack.c.bf16 %v561_v42, %v561_v42  ;;  %v543_v46 = vsel %vm479_vm8, %v354_v30, %v511_v38  ;;  %v559_v47 = vsel %vm495_vm9, %v418_v34, %v527_v39  ;;  %719 = vst.msk [vmem:[%s1058_s20 + $0x40] sm:$0xf] %vm702_vm4, %v883_v40  ;;  %v431_v53 = vpop.f32.mrb[5].mxu1  ;;  %v925_v54 = vpop.f32.mrb[6].mxu0 }
  0xf0   : > { %v868_v50 = vpack.c.bf16 %v543_v46, %v543_v46  ;;  %v884_v51 = vpack.c.bf16 %v559_v47, %v559_v47  ;;  %vm500_vm11 = vcmp.ge.f32.partialorder %v940_v48, 0.0  ;;  %v532_v55 = vmul.f32 0.2, %v940_v48  ;;  %v941_v59 = vpop.f32.mrb[6].mxu1  ;;  %v370_v60 = vpop.f32.mrb[7].mxu0 }
  0xf1   : > { %706 = vst.msk [vmem:[%s1058_s20 + $0xc] sm:$0xf] %vm702_vm4, %v870_v44  ;;  %722 = vst.msk [vmem:[%s1058_s20 + $0x4c] sm:$0xf] %vm702_vm4, %v886_v45  ;;  %vm482_vm12 = vcmp.ge.f32.partialorder %v367_v49, 0.0  ;;  %v548_v57 = vsel %vm484_vm10, %v924_v43, %v516_v52  ;;  %vm498_vm13 = vcmp.ge.f32.partialorder %v431_v53, 0.0 }
  0xf2   : > { %v514_v56 = vmul.f32 0.2, %v367_v49  ;;  %704 = vst.msk [vmem:[%s1058_s20 + $0x4] sm:$0xf] %vm702_vm4, %v868_v50  ;;  %720 = vst.msk [vmem:[%s1058_s20 + $0x44] sm:$0xf] %vm702_vm4, %v884_v51  ;;  %v873_v61 = vpack.c.bf16 %v548_v57, %v548_v57  ;;  %v564_v62 = vsel %vm500_vm11, %v940_v48, %v532_v55 }
  0xf3   : > { %v530_v58 = vmul.f32 0.2, %v431_v53  ;;  %vm485_vm14 = vcmp.ge.f32.partialorder %v925_v54, 0.0  ;;  %v517_v0 = vmul.f32 0.2, %v925_v54  ;;  %v434_v1 = vpop.f32.mrb[7].mxu1  ;;  %v889_v2 = vpack.c.bf16 %v564_v62, %v564_v62 }
  0xf4   : > { %v546_v63 = vsel %vm482_vm12, %v367_v49, %v514_v56  ;;  %vm501_vm15 = vcmp.ge.f32.partialorder %v941_v59, 0.0  ;;  %709 = vst.msk [vmem:[%s1058_s20 + $0x18] sm:$0xf] %vm702_vm4, %v873_v61  ;;  %v533_v7 = vmul.f32 0.2, %v941_v59  ;;  %vm483_vm0 = vcmp.ge.f32.partialorder %v370_v60, 0.0 }
  0xf5   : > { %v871_v3 = vpack.c.bf16 %v546_v63, %v546_v63  ;;  %v562_v4 = vsel %vm498_vm13, %v431_v53, %v530_v58  ;;  %v549_v6 = vsel %vm485_vm14, %v925_v54, %v517_v0  ;;  %725 = vst.msk [vmem:[%s1058_s20 + $0x58] sm:$0xf] %vm702_vm4, %v889_v2  ;;  %v515_v9 = vmul.f32 0.2, %v370_v60  ;;  %v928_v11 = vpop.f32.mrb[8].mxu0 }
  0xf6   : > { %v887_v5 = vpack.c.bf16 %v562_v4, %v562_v4  ;;  %v874_v8 = vpack.c.bf16 %v549_v6, %v549_v6  ;;  %vm499_vm1 = vcmp.ge.f32.partialorder %v434_v1, 0.0  ;;  %v531_v10 = vmul.f32 0.2, %v434_v1  ;;  %v944_v14 = vpop.f32.mrb[8].mxu1  ;;  %v383_v15 = vpop.f32.mrb[9].mxu0 }
  0xf7   : > { %707 = vst.msk [vmem:[%s1058_s20 + $0x10] sm:$0xf] %vm702_vm4, %v871_v3  ;;  %v565_v12 = vsel %vm501_vm15, %v941_v59, %v533_v7  ;;  %vm488_vm2 = vcmp.ge.f32.partialorder %v928_v11, 0.0  ;;  %v520_v13 = vmul.f32 0.2, %v928_v11  ;;  %v547_v17 = vsel %vm483_vm0, %v370_v60, %v515_v9  ;;  %v447_v19 = vpop.f32.mrb[9].mxu1 }
  0xf8   : > { %723 = vst.msk [vmem:[%s1058_s20 + $0x50] sm:$0xf] %vm702_vm4, %v887_v5  ;;  %710 = vst.msk [vmem:[%s1058_s20 + $0x1c] sm:$0xf] %vm702_vm4, %v874_v8  ;;  %v890_v16 = vpack.c.bf16 %v565_v12, %v565_v12  ;;  %v563_v18 = vsel %vm499_vm1, %v434_v1, %v531_v10  ;;  %vm504_vm3 = vcmp.ge.f32.partialorder %v944_v14, 0.0  ;;  %v929_v20 = vpop.f32.mrb[10].mxu0  ;;  %v872_v21 = vpack.c.bf16 %v547_v17, %v547_v17 }
  0xf9   : > { %v888_v22 = vpack.c.bf16 %v563_v18, %v563_v18  ;;  %v552_v23 = vsel %vm488_vm2, %v928_v11, %v520_v13  ;;  %v536_v24 = vmul.f32 0.2, %v944_v14  ;;  %v945_v25 = vpop.f32.mrb[10].mxu1  ;;  %v386_v26 = vpop.f32.mrb[11].mxu0  ;;  %vm486_vm5 = vcmp.ge.f32.partialorder %v383_v15, 0.0 }
  0xfa   : > { %726 = vst.msk [vmem:[%s1058_s20 + $0x5c] sm:$0xf] %vm702_vm4, %v890_v16  ;;  %v877_v27 = vpack.c.bf16 %v552_v23, %v552_v23  ;;  %v518_v28 = vmul.f32 0.2, %v383_v15  ;;  %vm502_vm6 = vcmp.ge.f32.partialorder %v447_v19, 0.0  ;;  %v450_v29 = vpop.f32.mrb[11].mxu1 }
  0xfb   : > { %708 = vst.msk [vmem:[%s1058_s20 + $0x14] sm:$0xf] %vm702_vm4, %v872_v21  ;;  %724 = vst.msk [vmem:[%s1058_s20 + $0x54] sm:$0xf] %vm702_vm4, %v888_v22  ;;  %v568_v30 = vsel %vm504_vm3, %v944_v14, %v536_v24  ;;  %v534_v31 = vmul.f32 0.2, %v447_v19 }
  0xfc   : > { %vm489_vm7 = vcmp.ge.f32.partialorder %v929_v20, 0.0  ;;  %v521_v32 = vmul.f32 0.2, %v929_v20  ;;  %713 = vst.msk [vmem:[%s1058_s20 + $0x28] sm:$0xf] %vm702_vm4, %v877_v27  ;;  %v893_v33 = vpack.c.bf16 %v568_v30, %v568_v30  ;;  %v550_v34 = vsel %vm486_vm5, %v383_v15, %v518_v28 }
  0xfd   : > { %vm505_vm8 = vcmp.ge.f32.partialorder %v945_v25, 0.0  ;;  %v537_v35 = vmul.f32 0.2, %v945_v25  ;;  %v875_v36 = vpack.c.bf16 %v550_v34, %v550_v34  ;;  %v566_v37 = vsel %vm502_vm6, %v447_v19, %v534_v31  ;;  %v932_v43 = vpop.f32.mrb[12].mxu0 }
  0xfe   : > { %v553_v38 = vsel %vm489_vm7, %v929_v20, %v521_v32  ;;  %vm487_vm9 = vcmp.ge.f32.partialorder %v386_v26, 0.0  ;;  %729 = vst.msk [vmem:[%s1058_s20 + $0x68] sm:$0xf] %vm702_vm4, %v893_v33  ;;  %v891_v39 = vpack.c.bf16 %v566_v37, %v566_v37  ;;  %v519_v42 = vmul.f32 0.2, %v386_v26  ;;  %v948_v46 = vpop.f32.mrb[12].mxu1 }
  0xff   : > { %v878_v40 = vpack.c.bf16 %v553_v38, %v553_v38  ;;  %v569_v41 = vsel %vm505_vm8, %v945_v25, %v537_v35  ;;  %711 = vst.msk [vmem:[%s1058_s20 + $0x20] sm:$0xf] %vm702_vm4, %v875_v36  ;;  %vm503_vm10 = vcmp.ge.f32.partialorder %v450_v29, 0.0  ;;  %v535_v45 = vmul.f32 0.2, %v450_v29  ;;  %v399_v47 = vpop.f32.mrb[13].mxu0 }
 0x100   : > { %v894_v44 = vpack.c.bf16 %v569_v41, %v569_v41  ;;  %vm492_vm11 = vcmp.ge.f32.partialorder %v932_v43, 0.0  ;;  %727 = vst.msk [vmem:[%s1058_s20 + $0x60] sm:$0xf] %vm702_vm4, %v891_v39  ;;  %v551_v48 = vsel %vm487_vm9, %v386_v26, %v519_v42  ;;  %v524_v49 = vmul.f32 0.2, %v932_v43  ;;  %v463_v51 = vpop.f32.mrb[13].mxu1 }
 0x101   : > { %714 = vst.msk [vmem:[%s1058_s20 + $0x2c] sm:$0xf] %vm702_vm4, %v878_v40  ;;  %vm508_vm12 = vcmp.ge.f32.partialorder %v948_v46, 0.0  ;;  %v540_v50 = vmul.f32 0.2, %v948_v46  ;;  %v876_v52 = vpack.c.bf16 %v551_v48, %v551_v48  ;;  %v567_v53 = vsel %vm503_vm10, %v450_v29, %v535_v45  ;;  %v933_v55 = vpop.f32.mrb[14].mxu0 }
 0x102   : > { %730 = vst.msk [vmem:[%s1058_s20 + $0x6c] sm:$0xf] %vm702_vm4, %v894_v44  ;;  %vm490_vm13 = vcmp.ge.f32.partialorder %v399_v47, 0.0  ;;  %v522_v54 = vmul.f32 0.2, %v399_v47  ;;  %v949_v56 = vpop.f32.mrb[14].mxu1  ;;  %v892_v57 = vpack.c.bf16 %v567_v53, %v567_v53  ;;  %v556_v58 = vsel %vm492_vm11, %v932_v43, %v524_v49 }
 0x103   : > { %v572_v59 = vsel %vm508_vm12, %v948_v46, %v540_v50  ;;  %vm506_vm14 = vcmp.ge.f32.partialorder %v463_v51, 0.0  ;;  %v402_v60 = vpop.f32.mrb[15].mxu0  ;;  %v466_v61 = vpop.f32.mrb[15].mxu1  ;;  %712 = vst.msk [vmem:[%s1058_s20 + $0x24] sm:$0xf] %vm702_vm4, %v876_v52  ;;  %v881_v62 = vpack.c.bf16 %v556_v58, %v556_v58  ;;  %vm493_vm15 = vcmp.ge.f32.partialorder %v933_v55, 0.0 }
 0x104   : > { %v897_v63 = vpack.c.bf16 %v572_v59, %v572_v59  ;;  %v554_v0 = vsel %vm490_vm13, %v399_v47, %v522_v54  ;;  %v538_v1 = vmul.f32 0.2, %v463_v51  ;;  %728 = vst.msk [vmem:[%s1058_s20 + $0x64] sm:$0xf] %vm702_vm4, %v892_v57  ;;  %v525_v3 = vmul.f32 0.2, %v933_v55 }
 0x105   : > { %v879_v2 = vpack.c.bf16 %v554_v0, %v554_v0  ;;  %vm509_vm0 = vcmp.ge.f32.partialorder %v949_v56, 0.0  ;;  %717 = vst.msk [vmem:[%s1058_s20 + $0x38] sm:$0xf] %vm702_vm4, %v881_v62  ;;  %v541_v5 = vmul.f32 0.2, %v949_v56  ;;  %vm491_vm1 = vcmp.ge.f32.partialorder %v402_v60, 0.0 }
 0x106   : > { %733 = vst.msk [vmem:[%s1058_s20 + $0x78] sm:$0xf] %vm702_vm4, %v897_v63  ;;  %v570_v4 = vsel %vm506_vm14, %v463_v51, %v538_v1  ;;  %v523_v6 = vmul.f32 0.2, %v402_v60  ;;  %v557_v8 = vsel %vm493_vm15, %v933_v55, %v525_v3  ;;  %vm507_vm2 = vcmp.ge.f32.partialorder %v466_v61, 0.0 }
 0x107   : > { %715 = vst.msk [vmem:[%s1058_s20 + $0x30] sm:$0xf] %vm702_vm4, %v879_v2  ;;  %v895_v7 = vpack.c.bf16 %v570_v4, %v570_v4  ;;  %v539_v9 = vmul.f32 0.2, %v466_v61  ;;  %v882_v10 = vpack.c.bf16 %v557_v8, %v557_v8  ;;  %v573_v11 = vsel %vm509_vm0, %v949_v56, %v541_v5 }
 0x108   : > { %v555_v12 = vsel %vm491_vm1, %v402_v60, %v523_v6  ;;  %v898_v13 = vpack.c.bf16 %v573_v11, %v573_v11 }
 0x109   : > { %731 = vst.msk [vmem:[%s1058_s20 + $0x70] sm:$0xf] %vm702_vm4, %v895_v7  ;;  %v880_v14 = vpack.c.bf16 %v555_v12, %v555_v12  ;;  %v571_v15 = vsel %vm507_vm2, %v466_v61, %v539_v9  ;;  %718 = vst.msk [vmem:[%s1058_s20 + $0x3c] sm:$0xf] %vm702_vm4, %v882_v10 }
 0x10a   : > { %v896_v16 = vpack.c.bf16 %v571_v15, %v571_v15  ;;  %734 = vst.msk [vmem:[%s1058_s20 + $0x7c] sm:$0xf] %vm702_vm4, %v898_v13 }
 0x10b   : > { %716 = vst.msk [vmem:[%s1058_s20 + $0x34] sm:$0xf] %vm702_vm4, %v880_v14 }
 0x10c   : > { %732 = vst.msk [vmem:[%s1058_s20 + $0x74] sm:$0xf] %vm702_vm4, %v896_v16 }
 0x10d PF: > { %s12_s9 = sadd.s32 1, %s983_s9  }
 0x10e   : > { %p9_p4 = scmp.ge.s32.totalorder %s12_s9, 4  }
 0x110   :  { %11 = sbr.rel (!%p9_p4) target bundleno = 1 (0x1), region = 58 }

// kernel: discriminator_forward.4
= control target key start
LH: loop header
LB: loop body
LE: loop exit
PB: predicated region body
PF: predicated region fallthrough
CT: control target
= control target key end

     0   :  { %s604_s12 = smov 0   ;;  %s679_s0 = inlined_call_operand.vmem [shape: bf16[128,128], index: 0, kind: input, shape index: {}]   ;;  %s680_s1 = inlined_call_operand.vmem [shape: bf16[128,16], index: 1, kind: input, shape index: {}]   ;;  %s681_s2 = inlined_call_operand.vmem [shape: f32[1,16], index: 2, kind: input, shape index: {}]   ;;  %s682_s3 = inlined_call_operand.vmem [shape: bf16[128,16], index: 3, kind: output, shape index: {}]  }
   0x1 LB: > { %s464_s13 = sadd.s32 4294967295, %s582_s12   ;;  %p468_p0 = scmp.ge.s32.totalorder %s582_s12, 1  ;;  %s582_s12 = sphi %s604_s12, %s13_s12  }
   0x2   : > { %p138_p1 = scmp.lt.s32.totalorder %s582_s12, 3 }
   0x4   : > { %p139_p2 = pnand %p468_p0, %p138_p1 }
   0x5   : > { %v564_v0 = vld [vmem:[%s680_s1] sm:$0xff] (!%p139_p2)   ;;  %s469_s16 = sshll.u32 (!%p139_p2), %s464_s13, 3  ;;  %v565_v1 = vld [vmem:[%s680_s1 + $0x8] sm:$0xff] (!%p139_p2)   ;;  %v566_v2 = vld [vmem:[%s680_s1 + $0x10] sm:$0xff] (!%p139_p2)   ;;  %vm399_vm0 = vcmask (!%p139_p2), 125952  }
   0x6   : > { %142 = sbr.rel (%p139_p2) target bundleno = 266 (0x10a), region = 32  ;;  %p163_p3 = scmp.lt.s32.totalorder (!%p139_p2), %s469_s16, 15  ;;  %516 = vmatprep.subr.bf16.mxu0 (!%p139_p2), %v564_v0  ;;  %540 = vmatprep.subr.bf16.mxu1 (!%p139_p2), %v564_v0  ;;  %v567_v3 = vld [vmem:[%s680_s1 + $0x18] sm:$0xff] (!%p139_p2)   ;;  %v568_v6 = vld [vmem:[%s680_s1 + $0x20] sm:$0xff] (!%p139_p2)   ;;  %v569_v7 = vld [vmem:[%s680_s1 + $0x28] sm:$0xff] (!%p139_p2)  }
   0x7   : > { %517 = vmatpush3.bf16.msra.mxu0 (!%p139_p2), %v564_v0  ;;  %548 = vmatpush3.bf16.msra.mxu1 (!%p139_p2), %v564_v0  ;;  %v570_v8 = vld [vmem:[%s680_s1 + $0x30] sm:$0xff] (!%p139_p2)   ;;  %v571_v9 = vld [vmem:[%s680_s1 + $0x38] sm:$0xff] (!%p139_p2)   ;;  %v473_v12 = vld [vmem:[%s681_s2] ss:$0 sm:$0xff] (!%p139_p2) }
   0x8   : > { %518 = vmatprep.subr.bf16.mxu0 (!%p139_p2), %v565_v1  ;;  %541 = vmatprep.subr.bf16.mxu1 (!%p139_p2), %v565_v1 }
   0xb   : > { %519 = vmatpush3.bf16.msra.mxu0 (!%p139_p2), %v565_v1  ;;  %549 = vmatpush3.bf16.msra.mxu1 (!%p139_p2), %v565_v1 }
   0xc   : > { %520 = vmatprep.subr.bf16.mxu0 (!%p139_p2), %v566_v2  ;;  %542 = vmatprep.subr.bf16.mxu1 (!%p139_p2), %v566_v2 }
   0xd   : > { %s684_s16 = smov (!%p163_p3, %s469_s16), 15 }
   0xe   : > { %s470_s21 = sshll.u32 %s684_s16, 2 }
   0xf   : > { %s629_s24 = scalar_lea.vmem %s679_s0, %s470_s21  ;;  %521 = vmatpush3.bf16.msra.mxu0 %v566_v2  ;;  %550 = vmatpush3.bf16.msra.mxu1 %v566_v2  ;;  %s658_s13 = scalar_lea.vmem %s682_s3, %s470_s21 }
  0x10   : > { %v572_v4 = vld [vmem:[%s629_s24] sm:$0xff]   ;;  %v573_v5 = vld [vmem:[%s629_s24 + $0x10] sm:$0xff]   ;;  %522 = vmatprep.subr.bf16.mxu0 %v567_v3  ;;  %543 = vmatprep.subr.bf16.mxu1 %v567_v3  ;;  %v574_v10 = vld [vmem:[%s629_s24 + $0x8] sm:$0xff]  }
  0x11   : > { %532 = vmatprep.mubr.bf16.mxu0 %v572_v4  ;;  %536 = vmatprep.mubr.bf16.mxu1 %v573_v5  ;;  %v575_v11 = vld [vmem:[%s629_s24 + $0x18] sm:$0xff]  }
  0x13   : > { %523 = vmatpush3.bf16.msra.mxu0 %v567_v3  ;;  %551 = vmatpush3.bf16.msra.mxu1 %v567_v3 }
  0x14   : > { %524 = vmatprep.subr.bf16.mxu0 %v568_v6  ;;  %544 = vmatprep.subr.bf16.mxu1 %v568_v6 }
  0x17   : > { %525 = vmatpush3.bf16.msra.mxu0 %v568_v6  ;;  %552 = vmatpush3.bf16.msra.mxu1 %v568_v6 }
  0x18   : > { %526 = vmatprep.subr.bf16.mxu0 %v569_v7  ;;  %545 = vmatprep.subr.bf16.mxu1 %v569_v7 }
  0x1b   : > { %527 = vmatpush3.bf16.msra.mxu0 %v569_v7  ;;  %553 = vmatpush3.bf16.msra.mxu1 %v569_v7 }
  0x1c   : > { %528 = vmatprep.subr.bf16.mxu0 %v570_v8  ;;  %546 = vmatprep.subr.bf16.mxu1 %v570_v8 }
  0x1f   : > { %529 = vmatpush3.bf16.msra.mxu0 %v570_v8  ;;  %554 = vmatpush3.bf16.msra.mxu1 %v570_v8 }
  0x20   : > { %530 = vmatprep.subr.bf16.mxu0 %v571_v9  ;;  %547 = vmatprep.subr.bf16.mxu1 %v571_v9 }
  0x23   : > { %531 = vmatpush3.bf16.msra.mxu0 %v571_v9  ;;  %555 = vmatpush3.bf16.msra.mxu1 %v571_v9 }
  0x26   : > { %533 = vmatmul.mubr.bf16.vlgmr.msra.gmra.mrb[0].mxu0 %v574_v10  ;;  %537 = vmatmul.mubr.bf16.vlgmr.msra.gmra.mrb[0].mxu1 %v575_v11 }
  0xf9   : > { %v534_v13 = vpop.f32.mrb[0].mxu0  ;;  %v538_v14 = vpop.f32.mrb[0].mxu1 }
  0xfa   : > { %v321_v15 = vadd.f32 %v534_v13, %v473_v12  ;;  %v337_v16 = vadd.f32 %v538_v14, %v473_v12  ;;  %v312_v17 = vpop.f32.mrb[1].mxu0  ;;  %v328_v18 = vpop.f32.mrb[1].mxu1 }
  0xfb   : > { %v313_v19 = vadd.f32 %v473_v12, %v312_v17  ;;  %v329_v20 = vadd.f32 %v473_v12, %v328_v18  ;;  %v535_v21 = vpop.f32.mrb[2].mxu0  ;;  %v539_v22 = vpop.f32.mrb[2].mxu1 }
  0xfc   : > { %vm345_vm1 = vcmp.ge.f32.partialorder %v321_v15, 0.0  ;;  %v353_v23 = vmul.f32 0.2, %v321_v15  ;;  %vm349_vm2 = vcmp.ge.f32.partialorder %v337_v16, 0.0  ;;  %v357_v24 = vmul.f32 0.2, %v337_v16 }
  0xfd   : > { %vm343_vm3 = vcmp.ge.f32.partialorder %v313_v19, 0.0  ;;  %v351_v25 = vmul.f32 0.2, %v313_v19  ;;  %vm347_vm4 = vcmp.ge.f32.partialorder %v329_v20, 0.0  ;;  %v355_v26 = vmul.f32 0.2, %v329_v20 }
  0xfe   : > { %v361_v27 = vsel %vm345_vm1, %v321_v15, %v353_v23  ;;  %v365_v28 = vsel %vm349_vm2, %v337_v16, %v357_v24  ;;  %v324_v29 = vadd.f32 %v535_v21, %v473_v12  ;;  %v340_v30 = vadd.f32 %v539_v22, %v473_v12  ;;  %v315_v31 = vpop.f32.mrb[3].mxu0  ;;  %v331_v32 = vpop.f32.mrb[3].mxu1 }
  0xff   : > { %v498_v33 = vpack.c.bf16 %v361_v27, %v361_v27  ;;  %v502_v34 = vpack.c.bf16 %v365_v28, %v365_v28  ;;  %v359_v35 = vsel %vm343_vm3, %v313_v19, %v351_v25  ;;  %v363_v36 = vsel %vm347_vm4, %v329_v20, %v355_v26 }
 0x100   : > { %v496_v37 = vpack.c.bf16 %v359_v35, %v359_v35  ;;  %v500_v38 = vpack.c.bf16 %v363_v36, %v363_v36  ;;  %vm346_vm5 = vcmp.ge.f32.partialorder %v324_v29, 0.0  ;;  %v354_v39 = vmul.f32 0.2, %v324_v29 }
 0x101   : > { %402 = vst.msk [vmem:[%s658_s13 + $0x8] sm:$0xf] %vm399_vm0, %v498_v33  ;;  %406 = vst.msk [vmem:[%s658_s13 + $0x18] sm:$0xf] %vm399_vm0, %v502_v34  ;;  %vm350_vm6 = vcmp.ge.f32.partialorder %v340_v30, 0.0  ;;  %v316_v41 = vadd.f32 %v473_v12, %v315_v31  ;;  %v332_v42 = vadd.f32 %v473_v12, %v331_v32 }
 0x102   : > { %v358_v40 = vmul.f32 0.2, %v340_v30  ;;  %400 = vst.msk [vmem:[%s658_s13] sm:$0xf] %vm399_vm0, %v496_v37  ;;  %404 = vst.msk [vmem:[%s658_s13 + $0x10] sm:$0xf] %vm399_vm0, %v500_v38  ;;  %v362_v43 = vsel %vm346_vm5, %v324_v29, %v354_v39 }
 0x103   : > { %v499_v44 = vpack.c.bf16 %v362_v43, %v362_v43  ;;  %vm344_vm7 = vcmp.ge.f32.partialorder %v316_v41, 0.0  ;;  %v352_v46 = vmul.f32 0.2, %v316_v41  ;;  %vm348_vm8 = vcmp.ge.f32.partialorder %v332_v42, 0.0 }
 0x104   : > { %v366_v45 = vsel %vm350_vm6, %v340_v30, %v358_v40  ;;  %v356_v48 = vmul.f32 0.2, %v332_v42 }
 0x105   : > { %v503_v47 = vpack.c.bf16 %v366_v45, %v366_v45  ;;  %403 = vst.msk [vmem:[%s658_s13 + $0xc] sm:$0xf] %vm399_vm0, %v499_v44  ;;  %v360_v49 = vsel %vm344_vm7, %v316_v41, %v352_v46 }
 0x106   : > { %v497_v50 = vpack.c.bf16 %v360_v49, %v360_v49  ;;  %v364_v51 = vsel %vm348_vm8, %v332_v42, %v356_v48 }
 0x107   : > { %407 = vst.msk [vmem:[%s658_s13 + $0x1c] sm:$0xf] %vm399_vm0, %v503_v47  ;;  %v501_v52 = vpack.c.bf16 %v364_v51, %v364_v51 }
 0x108   : > { %401 = vst.msk [vmem:[%s658_s13 + $0x4] sm:$0xf] %vm399_vm0, %v497_v50 }
 0x109   : > { %405 = vst.msk [vmem:[%s658_s13 + $0x14] sm:$0xf] %vm399_vm0, %v501_v52 }
 0x10a PF: > { %s13_s12 = sadd.s32 1, %s582_s12  }
 0x10b   : > { %p10_p4 = scmp.ge.s32.totalorder %s13_s12, 4  }
 0x10d   :  { %12 = sbr.rel (!%p10_p4) target bundleno = 1 (0x1), region = 62 }

// kernel: discriminator_forward.5
= control target key start
LH: loop header
LB: loop body
LE: loop exit
PB: predicated region body
PF: predicated region fallthrough
CT: control target
= control target key end

     0   :  { %s466_s12 = smov 0   ;;  %s517_s0 = inlined_call_operand.vmem [shape: bf16[32,144], index: 0, kind: input, shape index: {}]   ;;  %s518_s1 = inlined_call_operand.vmem [shape: bf16[144,32], index: 1, kind: input, shape index: {}]   ;;  %s519_s2 = inlined_call_operand.vmem [shape: f32[1,32], index: 2, kind: input, shape index: {}]   ;;  %s520_s3 = inlined_call_operand.vmem [shape: bf16[32,32], index: 3, kind: output, shape index: {}]  }
   0x1 LB: > { %s386_s13 = sadd.s32 4294967295, %s443_s12   ;;  %p390_p0 = scmp.ge.s32.totalorder %s443_s12, 1  ;;  %s443_s12 = sphi %s466_s12, %s13_s12  }
   0x2   : > { %p139_p1 = scmp.lt.s32.totalorder %s443_s12, 3 }
   0x4   : > { %p140_p2 = pnand %p390_p0, %p139_p1 }
   0x5   : > { %v425_v0 = vld [vmem:[%s518_s1] sm:$0xff] (!%p140_p2)   ;;  %v445_v1 = vmov (!%p140_p2), 0   ;;  %s391_s16 = sshll.u32 (!%p140_p2), %s386_s13, 1  ;;  %v426_v2 = vld [vmem:[%s518_s1 + $0x8] sm:$0xff] (!%p140_p2)   ;;  %v427_v3 = vld [vmem:[%s518_s1 + $0x10] sm:$0xff] (!%p140_p2)   ;;  %vm268_vm0 = vcmask (!%p140_p2), 130048  }
   0x6   : > { %143 = sbr.rel (%p140_p2) target bundleno = 264 (0x108), region = 32  ;;  %272 = vmatprep.subr.bf16.mxu0 (!%p140_p2), %v445_v1  ;;  %p165_p3 = scmp.lt.s32.totalorder (!%p140_p2), %s391_s16, 3  ;;  %v428_v4 = vld [vmem:[%s518_s1 + $0x18] sm:$0xff] (!%p140_p2)   ;;  %v429_v6 = vld [vmem:[%s518_s1 + $0x20] sm:$0xff] (!%p140_p2)   ;;  %v430_v7 = vld [vmem:[%s518_s1 + $0x28] sm:$0xff] (!%p140_p2)   ;;  %vm327_vm2 = vcmask (!%p140_p2), 257024  }
   0x7   : > { %273 = vmatpush1.bf16.msra.mxu0 (!%p140_p2), %v425_v0  ;;  %v431_v8 = vld [vmem:[%s518_s1 + $0x30] sm:$0xff] (!%p140_p2)   ;;  %v432_v9 = vld [vmem:[%s518_s1 + $0x38] sm:$0xff] (!%p140_p2)   ;;  %v433_v10 = vld [vmem:[%s518_s1 + $0x40] sm:$0xff] (!%p140_p2)  }
   0x8   : > { %274 = vmatprep.subr.bf16.mxu0 (!%p140_p2), %v445_v1  ;;  %v396_v12 = vld [vmem:[%s519_s2] ss:$0 sm:$0xff] (!%p140_p2) }
   0xb   : > { %275 = vmatpush1.bf16.msra.mxu0 (!%p140_p2), %v426_v2 }
   0xc   : > { %276 = vmatprep.subr.bf16.mxu0 (!%p140_p2), %v445_v1 }
   0xd   : > { %s522_s16 = smov (!%p165_p3, %s391_s16), 3 }
   0xe   : > { %s413_s21 = sshll.u32 %s522_s16, 3  ;;  %s395_s13 = sshll.u32 %s522_s16, 2 }
   0xf   : > { %s169_s24 = scalar_lea.vmem %s517_s0, %s413_s21  ;;  %277 = vmatpush1.bf16.msra.mxu0 %v427_v3  ;;  %s175_s17 = scalar_lea.vmem %s520_s3, %s395_s13 }
  0x10   : > { %v436_v5 = vld [vmem:[%s169_s24 + $0x4] ss:$8 sps:$4 sm:$0xff]   ;;  %278 = vmatprep.subr.bf16.mxu0 %v445_v1  ;;  %v434_v11 = vld [vmem:[%s169_s24] ss:$8 sps:$4 sm:$0xff]  }
  0x11   : > { %408 = vmatprep.mubr.msk.bf16.mxu0 %vm268_vm0, %v436_v5 }
  0x13   : > { %279 = vmatpush1.bf16.msra.mxu0 %v428_v4 }
  0x14   : > { %280 = vmatprep.subr.bf16.mxu0 %v445_v1 }
  0x17   : > { %281 = vmatpush1.bf16.msra.mxu0 %v429_v6 }
  0x18   : > { %282 = vmatprep.subr.bf16.mxu0 %v445_v1 }
  0x1b   : > { %283 = vmatpush1.bf16.msra.mxu0 %v430_v7 }
  0x1c   : > { %284 = vmatprep.subr.bf16.mxu0 %v445_v1 }
  0x1f   : > { %285 = vmatpush1.bf16.msra.mxu0 %v431_v8 }
  0x20   : > { %286 = vmatprep.subr.bf16.mxu0 %v445_v1 }
  0x23   : > { %287 = vmatpush1.bf16.msra.mxu0 %v432_v9 }
  0x24   : > { %288 = vmatprep.subr.bf16.mxu0 %v445_v1 }
  0x27   : > { %289 = vmatpush1.bf16.msra.mxu0 %v433_v10 }
  0x2a   : > { %305 = vmatmul.mubr.bf16.vlgmr.msra.gmra.mrb[0].mxu0 %v434_v11 }
  0xfd   : > { %v306_v13 = vpop.f32.mrb[0].mxu0 }
  0xfe   : > { %v307_v14 = vadd.f32 %v396_v12, %v306_v13  ;;  %v308_v15 = vpop.f32.mrb[1].mxu0 }
  0xff   : > { %v309_v16 = vpop.f32.mrb[2].mxu0 }
 0x100   : > { %vm313_vm1 = vcmp.ge.f32.partialorder %v307_v14, 0.0  ;;  %v315_v17 = vmul.f32 0.2, %v307_v14  ;;  %v310_v18 = vadd.f32 %v396_v12, %v309_v16  ;;  %v311_v19 = vpop.f32.mrb[3].mxu0 }
 0x102   : > { %v317_v20 = vsel %vm313_vm1, %v307_v14, %v315_v17  ;;  %vm314_vm3 = vcmp.ge.f32.partialorder %v310_v18, 0.0  ;;  %v316_v21 = vmul.f32 0.2, %v310_v18 }
 0x103   : > { %v414_v22 = vpack.c.bf16 %v317_v20, %v317_v20 }
 0x104   : > { %v318_v23 = vsel %vm314_vm3, %v310_v18, %v316_v21 }
 0x105   : > { %328 = vst.msk [vmem:[%s175_s17] sm:$0xf] %vm327_vm2, %v414_v22  ;;  %v415_v24 = vpack.c.bf16 %v318_v23, %v318_v23 }
 0x107   : > { %329 = vst.msk [vmem:[%s175_s17 + $0x4] sm:$0xf] %vm327_vm2, %v415_v24 }
 0x108 PF: > { %s13_s12 = sadd.s32 1, %s443_s12  }
 0x109   : > { %p10_p4 = scmp.ge.s32.totalorder %s13_s12, 4  }
 0x10b   :  { %12 = sbr.rel (!%p10_p4) target bundleno = 1 (0x1), region = 62 }

</bundles_post_ra>
